<compile_context>
chip_gen: v7x
topology: tpu7x:2x2x1
jax: 0.10.0
libtpu: 0.0.40
codegen_flags: <defaults>
</compile_context>

<pallas_src>
import functools
import math

import jax
import jax.numpy as jnp
from jax import lax
from jax.experimental import pallas as pl
from jax.experimental.pallas import tpu as pltpu

# bf16 matmul inputs halve the dominant patch DMA traffic and double MXU rate on v5e/v6e/v7x
# (this kernel is HBM-bound at ~3 flops/byte).  Accumulation is f32.  Input quantization puts
# the post-BatchNorm error at ~1e-2 vs the f32 reference, so the check in __main__ uses a
# 3e-2 tolerance for bf16 (1e-3 if this is set back to jnp.float32).
MATMUL_DTYPE = jnp.bfloat16
_EPS = 1e-5
_SQRT_HALF = 1.0 / math.sqrt(2.0)


def _round_up(x, m):
    return (x + m - 1) // m * m


def _vmem_capacity_bytes():
    """Per-TensorCore VMEM: 128 MiB on v5e/v6e, 64 MiB on v7x.  Conservative fallback."""
    try:
        cap = int(pltpu.get_tpu_info().vmem_capacity_bytes)
    except Exception:  # pragma: no cover - query not available
        cap = 64 * 1024 * 1024
    return max(cap, 16 * 1024 * 1024)


def _pick_row_tile(r, k, c_out, budget_bytes):
    """Largest 128-multiple row tile whose double-buffered patches + output tiles fit the
    budget, preferring >= 2 grid steps so BlockSpec DMA overlaps compute."""
    in_bytes = jnp.dtype(MATMUL_DTYPE).itemsize
    r128 = _round_up(r, 128)

    def cost(t):  # double-buffered (K, t) patches (bf16) + (C_out, t) output (f32)
        return 2 * t * (k * in_bytes + c_out * 4)

    cands = [t for t in (16384, 8192, 4096, 2048, 1024, 512, 256, 128)
             if t <= r128 and cost(t) <= budget_bytes]
    if not cands:
        return 128
    for t in cands:                       # descending: biggest tile with >= 2 pipeline steps
        if (r128 + t - 1) // t >= 2:
            return t
    return cands[0]


# ----------------------------- fused kernel (primary path) -----------------------------
def _fused_conv_bn_gelu_kernel(patches_ref, w_ref, gamma_ref, beta_ref, out_ref,
                               y_scr, sum_scr, sumsq_scr, scale_scr, shift_scr,
                               *, inv_r):
    phase = pl.program_id(0)
    i = pl.program_id(1)

    @pl.when(phase == 0)
    def _conv_and_stats():
        @pl.when(i == 0)
        def _init():
            sum_scr[...] = jnp.zeros_like(sum_scr)
            sumsq_scr[...] = jnp.zeros_like(sumsq_scr)

        # (C_out, K) @ (K, tile_R): lane-dense MXU tile, bf16 inputs, f32 accumulation.
        y = jnp.dot(w_ref[...], patches_ref[...], preferred_element_type=jnp.float32)
        y_scr[i] = y                                            # Y stays VMEM-resident
        sum_scr[...] += jnp.sum(y, axis=1, keepdims=True)       # XLU lane reductions
        sumsq_scr[...] += jnp.sum(y * y, axis=1, keepdims=True)

        @pl.when(i == pl.num_programs(1) - 1)
        def _fold():
            # Train-mode BatchNorm fold (biased variance), computed once per call.
            # Padded (zero) columns contribute nothing to sum/sumsq; inv_r uses the true R.
            mean = sum_scr[...] * inv_r
            var = jnp.maximum(sumsq_scr[...] * inv_r - mean * mean, 0.0)
            scale = gamma_ref[...] * lax.rsqrt(var + _EPS)
            scale_scr[...] = scale
            shift_scr[...] = beta_ref[...] - mean * scale

    @pl.when(phase == 1)
    def _bn_gelu():
        y = y_scr[i] * scale_scr[...] + shift_scr[...]
        # Exact-erf GELU (matches nn.GELU()).  TODO(synk): on v5e the erf polynomial sits on
        # the f32-only VALU; a tanh/EUP GELU is cheaper there but drifts ~3e-3 from exact.
        out_ref[...] = 0.5 * y * (1.0 + lax.erf(y * _SQRT_HALF))


# -------------------------- streamed two-pass fallback (big Y) --------------------------
def _conv_stats_kernel(patches_ref, w_ref, y_ref, psum_ref, psumsq_ref):
    y = jnp.dot(w_ref[...], patches_ref[...], preferred_element_type=jnp.float32)
    y_ref[...] = y
    # Per-tile partial stats (reduced in the wrapper) keep this grid axis "parallel",
    # letting both v7x TensorCores work on pass 1.
    psum_ref[...] = jnp.sum(y, axis=1, keepdims=True)[None]
    psumsq_ref[...] = jnp.sum(y * y, axis=1, keepdims=True)[None]


def _bn_gelu_kernel(y_ref, scale_ref, shift_ref, out_ref):
    y = y_ref[...] * scale_ref[...] + shift_ref[...]
    out_ref[...] = 0.5 * y * (1.0 + lax.erf(y * _SQRT_HALF))


def _conv_bn_gelu_two_pass(patches, w_mat, gamma2d, beta2d, r_true, tile_r, n_tiles,
                           vmem_limit):
    k, r_pad = patches.shape
    c_out = w_mat.shape[0]
    y, psum, psumsq = pl.pallas_call(
        _conv_stats_kernel,
        out_shape=(jax.ShapeDtypeStruct((c_out, r_pad), jnp.float32),
                   jax.ShapeDtypeStruct((n_tiles, c_out, 1), jnp.float32),
                   jax.ShapeDtypeStruct((n_tiles, c_out, 1), jnp.float32)),
        grid=(n_tiles,),
        in_specs=[pl.BlockSpec((k, tile_r), lambda i: (0, i)),
                  pl.BlockSpec((c_out, k), lambda i: (0, 0))],
        out_specs=(pl.BlockSpec((c_out, tile_r), lambda i: (0, i)),
                   pl.BlockSpec((1, c_out, 1), lambda i: (i, 0, 0)),
                   pl.BlockSpec((1, c_out, 1), lambda i: (i, 0, 0))),
        compiler_params=pltpu.CompilerParams(
            dimension_semantics=("parallel",), vmem_limit_bytes=vmem_limit),
    )(patches, w_mat)

    mean = jnp.sum(psum, axis=0) / r_true                       # tiny (C_out, 1) fold
    var = jnp.maximum(jnp.sum(psumsq, axis=0) / r_true - mean * mean, 0.0)
    scale = gamma2d * lax.rsqrt(var + _EPS)
    shift = beta2d - mean * scale

    return pl.pallas_call(
        _bn_gelu_kernel,
        out_shape=jax.ShapeDtypeStruct((c_out, r_pad), jnp.float32),
        grid=(n_tiles,),
        in_specs=[pl.BlockSpec((c_out, tile_r), lambda i: (0, i)),
                  pl.BlockSpec((c_out, 1), lambda i: (0, 0)),
                  pl.BlockSpec((c_out, 1), lambda i: (0, 0))],
        out_specs=pl.BlockSpec((c_out, tile_r), lambda i: (0, i)),
        input_output_aliases={0: 0},   # Y is dead after this pass: reuse its HBM buffer
        compiler_params=pltpu.CompilerParams(
            dimension_semantics=("parallel",), vmem_limit_bytes=vmem_limit),
    )(y, scale, shift)


# ----------------------------------- Pallas wrapper ------------------------------------
def conv_bn_gelu_pallas(patches, w_mat, gamma2d, beta2d, n, ho, wo):
    """patches: (K, R) MATMUL_DTYPE with R = N*Ho*Wo (n-major); w_mat: (C_out, K);
    gamma2d/beta2d: (C_out, 1) f32.  Returns NCHW float32."""
    k, r = patches.shape
    r_true = n * ho * wo
    assert r == r_true, (r, r_true)
    c_out = w_mat.shape[0]
    hw = ho * wo

    cap = _vmem_capacity_bytes()
    vmem_limit = (cap * 3) // 4
    tile_budget = cap // 4
    y_budget = cap // 4
    in_bytes = jnp.dtype(MATMUL_DTYPE).itemsize

    # Direct-NCHW mode: one image per row tile -> kernel output is (N, C_out, Ho*Wo), i.e.
    # NCHW up to a free reshape (no wrapper transpose, no R padding).
    direct = (hw % 128 == 0) and (2 * hw * (k * in_bytes + c_out * 4) <= tile_budget)
    if direct:
        tile_r, r_pad = hw, r
    else:
        tile_r = _pick_row_tile(r, k, c_out, tile_budget)
        r_pad = _round_up(r, tile_r)
        if r_pad != r:   # zero pad columns: stats still divide by the true R
            patches = jnp.pad(patches, ((0, 0), (0, r_pad - r)))
    n_tiles = r_pad // tile_r

    fused = c_out * r_pad * 4 <= y_budget   # can Y stay VMEM-resident?
    if fused:
        kernel = functools.partial(_fused_conv_bn_gelu_kernel, inv_r=1.0 / r_true)
        if direct:
            out_shape = jax.ShapeDtypeStruct((n, c_out, hw), jnp.float32)
            out_spec = pl.BlockSpec((None, c_out, hw), lambda p, i: (i * p, 0, 0))
        else:
            out_shape = jax.ShapeDtypeStruct((c_out, r_pad), jnp.float32)
            out_spec = pl.BlockSpec((c_out, tile_r), lambda p, i: (0, i * p))
        out = pl.pallas_call(
            kernel,
            out_shape=out_shape,
            grid=(2, n_tiles),   # phase 0: conv+stats, phase 1: BN fold + GELU
            in_specs=[
                # phase 1 re-requests block 0 only, so patches are DMA'd ~once overall
                pl.BlockSpec((k, tile_r), lambda p, i: (0, i * (1 - p))),
                pl.BlockSpec((c_out, k), lambda p, i: (0, 0)),
                pl.BlockSpec((c_out, 1), lambda p, i: (0, 0)),
                pl.BlockSpec((c_out, 1), lambda p, i: (0, 0)),
            ],
            out_specs=out_spec,
            scratch_shapes=[
                pltpu.VMEM((n_tiles, c_out, tile_r), jnp.float32),  # resident Y
                pltpu.VMEM((c_out, 1), jnp.float32),                # sum
                pltpu.VMEM((c_out, 1), jnp.float32),                # sum of squares
                pltpu.VMEM((c_out, 1), jnp.float32),                # folded scale
                pltpu.VMEM((c_out, 1), jnp.float32),                # folded shift
            ],
            compiler_params=pltpu.CompilerParams(
                dimension_semantics=("arbitrary", "arbitrary"),
                vmem_limit_bytes=vmem_limit),
        )(patches, w_mat, gamma2d, beta2d)
        if direct:
            return out.reshape(n, c_out, ho, wo)     # free reshape, no transpose
    else:
        out = _conv_bn_gelu_two_pass(patches, w_mat, gamma2d, beta2d, r_true,
                                     tile_r, n_tiles, vmem_limit)

    # Generic lane-dense (C_out, R) -> NCHW (extra HBM pass; the direct path above avoids it,
    # and a downstream consumer accepting (C_out, N, Ho, Wo) could drop it entirely).
    return out[:, :r_true].reshape(c_out, n, ho, wo).transpose(1, 0, 2, 3)


# -------------------------------------- JAX glue ----------------------------------------
def im2col_kt(x, kh, kw, stride, padding, dtype):
    """NCHW -> patches in (K, R) = (C*kh*kw, N*Ho*Wo) layout, emitted directly in `dtype`
    (so the materialized patch array is bf16-sized).  K ordered (c, ky, kx) to match
    weight.reshape(C_out, C_in*kh*kw)."""
    n, c, h, w = x.shape
    xp = jnp.pad(x, ((0, 0), (0, 0), (padding, padding), (padding, padding))).astype(dtype)
    ho = (h + 2 * padding - kh) // stride + 1
    wo = (w + 2 * padding - kw) // stride + 1
    cols = []
    for ky in range(kh):
        for kx in range(kw):
            cols.append(xp[:, :, ky:ky + ho * stride:stride, kx:kx + wo * stride:stride])
    patches = jnp.stack(cols, axis=2)              # (N, C, kh*kw, Ho, Wo)
    patches = patches.transpose(1, 2, 0, 3, 4)     # (C, kh*kw, N, Ho, Wo)
    return patches.reshape(c * kh * kw, n * ho * wo), (n, ho, wo)


def basic_conv_forward(x, weight, gamma, beta, *, stride=1, padding=0):
    """x: NCHW float32; weight: (C_out, C_in, KH, KW); gamma/beta: (C_out,).
    Returns NCHW float32 (Conv2d -> train-mode BatchNorm2d -> exact GELU)."""
    c_out, c_in, kh, kw = weight.shape
    patches, (n, ho, wo) = im2col_kt(x, kh, kw, stride, padding, MATMUL_DTYPE)
    w_mat = weight.reshape(c_out, c_in * kh * kw).astype(MATMUL_DTYPE)
    gamma2d = gamma.reshape(c_out, 1).astype(jnp.float32)
    beta2d = beta.reshape(c_out, 1).astype(jnp.float32)
    return conv_bn_gelu_pallas(patches, w_mat, gamma2d, beta2d, n, ho, wo)


# -------------------------------------- Reference ---------------------------------------
def basic_conv_reference(x, weight, gamma, beta, *, stride=1, padding=0):
    y = lax.conv_general_dilated(
        x, weight, window_strides=(stride, stride),
        padding=((padding, padding), (padding, padding)),
        dimension_numbers=("NCHW", "OIHW", "NCHW"))
    mean = jnp.mean(y, axis=(0, 2, 3), keepdims=True)
    var = jnp.mean((y - mean) ** 2, axis=(0, 2, 3), keepdims=True)
    y = (y - mean) / jnp.sqrt(var + 1e-5)
    y = y * gamma.reshape(1, -1, 1, 1) + beta.reshape(1, -1, 1, 1)
    return jax.nn.gelu(y, approximate=False)


# ---------------------------------------- Main ------------------------------------------
if __name__ == "__main__":
    # BasicConv(in_planes=4, out_planes=8, kernel_size=3, stride=1, padding=1,
    #           relu=True, bn=True, bias=False)
    N, C_in, H, W = 2, 4, 16, 16
    C_out, KH, KW = 8, 3, 3
    stride, padding = 1, 1

    key = jax.random.PRNGKey(0)
    k_x, k_w = jax.random.split(key)
    x = jax.random.normal(k_x, (N, C_in, H, W), dtype=jnp.float32)
    weight = 0.1 * jax.random.normal(k_w, (C_out, C_in, KH, KW), dtype=jnp.float32)
    gamma = jnp.ones((C_out,), dtype=jnp.float32)   # BatchNorm2d default affine init
    beta = jnp.zeros((C_out,), dtype=jnp.float32)

    out = basic_conv_forward(x, weight, gamma, beta, stride=stride, padding=padding)
    out = jax.block_until_ready(out)

    ref = basic_conv_reference(x, weight, gamma, beta, stride=stride, padding=padding)
    assert out.shape == (N, C_out, H, W), out.shape
    # bf16 matmul inputs (recommended by the perf review) leave ~1e-2 max error after the
    # BatchNorm rescaling; f32 inputs stay within 1e-3 of the PyTorch-equivalent reference.
    tol = 1e-3 if MATMUL_DTYPE == jnp.float32 else 3e-2
    err = float(jnp.max(jnp.abs(out - ref)))
    assert err < tol, err

    print("KERNEL_OK")
</pallas_src>

<mosaic_0001>
module attributes {stable_mosaic.version = 11 : i64} {
  func.func @_fused_conv_bn_gelu_kernel(%arg0: i32, %arg1: i32, %arg2: memref<36x256xbf16, #tpu.memory_space<vmem>>, %arg3: memref<8x36xbf16, #tpu.memory_space<vmem>>, %arg4: memref<8x1xf32, #tpu.memory_space<vmem>>, %arg5: memref<8x1xf32, #tpu.memory_space<vmem>>, %arg6: memref<1x8x256xf32, #tpu.memory_space<vmem>>, %arg7: memref<2x8x256xf32, #tpu.memory_space<vmem>>, %arg8: memref<8x1xf32, #tpu.memory_space<vmem>>, %arg9: memref<8x1xf32, #tpu.memory_space<vmem>>, %arg10: memref<8x1xf32, #tpu.memory_space<vmem>>, %arg11: memref<8x1xf32, #tpu.memory_space<vmem>>) attributes {dimension_semantics = [#tpu.dimension_semantics<arbitrary>, #tpu.dimension_semantics<arbitrary>], iteration_bounds = array<i64: 2, 2>, scalar_prefetch = 0 : i64, scratch_operands = 5 : i64, tpu.core_type = #tpu.core_type<tc>, window_params = [{transform_indices = @transform_0, window_bounds = array<i64: 36, 256>}, {pipeline_mode = #tpu.pipeline_mode<synchronous>, transform_indices = @transform_1, window_bounds = array<i64: 8, 36>}, {pipeline_mode = #tpu.pipeline_mode<synchronous>, transform_indices = @transform_2, window_bounds = array<i64: 8, 1>}, {pipeline_mode = #tpu.pipeline_mode<synchronous>, transform_indices = @transform_3, window_bounds = array<i64: 8, 1>}, {transform_indices = @transform_4, window_bounds = array<i64: 1, 8, 256>}]} {
    %c0_i32 = arith.constant 0 : i32
    %0 = arith.cmpi eq, %arg0, %c0_i32 : i32
    %1 = arith.extui %0 : i1 to i32
    %c0_i32_0 = arith.constant 0 : i32
    %2 = arith.cmpi ne, %1, %c0_i32_0 : i32
    scf.if %2 {
      %c0_i32_2 = arith.constant 0 : i32
      %6 = arith.cmpi eq, %arg1, %c0_i32_2 : i32
      %7 = arith.extui %6 : i1 to i32
      %c0_i32_3 = arith.constant 0 : i32
      %8 = arith.cmpi ne, %7, %c0_i32_3 : i32
      scf.if %8 {
        %cst_21 = arith.constant 0.000000e+00 : f32
        %30 = vector.broadcast %cst_21 : f32 to vector<8x1xf32>
        %c0_22 = arith.constant 0 : index
        %c0_23 = arith.constant 0 : index
        %31 = vector.load %arg8[%c0_22, %c0_23] : memref<8x1xf32, #tpu.memory_space<vmem>>, vector<8x1xf32>
        tpu.vector_store %arg8[%c0_22, %c0_23], %30 {strides = array<i32>} : memref<8x1xf32, #tpu.memory_space<vmem>>, vector<8x1xf32>,
        %cst_24 = arith.constant 0.000000e+00 : f32
        %32 = vector.broadcast %cst_24 : f32 to vector<8x1xf32>
        %c0_25 = arith.constant 0 : index
        %c0_26 = arith.constant 0 : index
        %33 = vector.load %arg9[%c0_25, %c0_26] : memref<8x1xf32, #tpu.memory_space<vmem>>, vector<8x1xf32>
        tpu.vector_store %arg9[%c0_25, %c0_26], %32 {strides = array<i32>} : memref<8x1xf32, #tpu.memory_space<vmem>>, vector<8x1xf32>,
      } else {
      }
      %c0 = arith.constant 0 : index
      %c0_4 = arith.constant 0 : index
      %9 = vector.load %arg3[%c0, %c0_4] : memref<8x36xbf16, #tpu.memory_space<vmem>>, vector<8x36xbf16>
      %c0_5 = arith.constant 0 : index
      %c0_6 = arith.constant 0 : index
      %10 = vector.load %arg2[%c0_5, %c0_6] : memref<36x256xbf16, #tpu.memory_space<vmem>>, vector<36x256xbf16>
      %cst = arith.constant dense<0.000000e+00> : vector<8x256xf32>
      %11 = tpu.matmul %9, %10, %cst {dimension_numbers = #tpu.dot_dimension_numbers<[1], [0], [0], [1], [0, 0, 1, 1], [], []>} : vector<8x36xbf16>, vector<36x256xbf16>, vector<8x256xf32> -> vector<8x256xf32>
      %12 = arith.index_cast %arg1 : i32 to index
      %c0_7 = arith.constant 0 : index
      %c0_8 = arith.constant 0 : index
      %13 = vector.load %arg7[%12, %c0_7, %c0_8] : memref<2x8x256xf32, #tpu.memory_space<vmem>>, vector<1x8x256xf32>
      %14 = vector.shape_cast %13 : vector<1x8x256xf32> to vector<8x256xf32>
      %15 = vector.shape_cast %11 : vector<8x256xf32> to vector<1x8x256xf32>
      tpu.vector_store %arg7[%12, %c0_7, %c0_8], %15 {strides = array<i32>} : memref<2x8x256xf32, #tpu.memory_space<vmem>>, vector<1x8x256xf32>,
      %c0_9 = arith.constant 0 : index
      %c0_10 = arith.constant 0 : index
      %16 = vector.load %arg8[%c0_9, %c0_10] : memref<8x1xf32, #tpu.memory_space<vmem>>, vector<8x1xf32>
      %cst_11 = arith.constant dense<0.000000e+00> : vector<8xf32>
      %17 = vector.multi_reduction <add>, %11, %cst_11 [1] : vector<8x256xf32> to vector<8xf32>
      %18 = vector.shape_cast %17 : vector<8xf32> to vector<8x1xf32>
      %19 = arith.addf %16, %18 : vector<8x1xf32>
      %c0_12 = arith.constant 0 : index
      %c0_13 = arith.constant 0 : index
      %20 = vector.load %arg8[%c0_12, %c0_13] : memref<8x1xf32, #tpu.memory_space<vmem>>, vector<8x1xf32>
      tpu.vector_store %arg8[%c0_12, %c0_13], %19 {strides = array<i32>} : memref<8x1xf32, #tpu.memory_space<vmem>>, vector<8x1xf32>,
      %c0_14 = arith.constant 0 : index
      %c0_15 = arith.constant 0 : index
      %21 = vector.load %arg9[%c0_14, %c0_15] : memref<8x1xf32, #tpu.memory_space<vmem>>, vector<8x1xf32>
      %22 = arith.mulf %11, %11 : vector<8x256xf32>
      %cst_16 = arith.constant dense<0.000000e+00> : vector<8xf32>
      %23 = vector.multi_reduction <add>, %22, %cst_16 [1] : vector<8x256xf32> to vector<8xf32>
      %24 = vector.shape_cast %23 : vector<8xf32> to vector<8x1xf32>
      %25 = arith.addf %21, %24 : vector<8x1xf32>
      %c0_17 = arith.constant 0 : index
      %c0_18 = arith.constant 0 : index
      %26 = vector.load %arg9[%c0_17, %c0_18] : memref<8x1xf32, #tpu.memory_space<vmem>>, vector<8x1xf32>
      tpu.vector_store %arg9[%c0_17, %c0_18], %25 {strides = array<i32>} : memref<8x1xf32, #tpu.memory_space<vmem>>, vector<8x1xf32>,
      %c1_i32_19 = arith.constant 1 : i32
      %27 = arith.cmpi eq, %arg1, %c1_i32_19 : i32
      %28 = arith.extui %27 : i1 to i32
      %c0_i32_20 = arith.constant 0 : i32
      %29 = arith.cmpi ne, %28, %c0_i32_20 : i32
      scf.if %29 {
        %c0_21 = arith.constant 0 : index
        %c0_22 = arith.constant 0 : index
        %30 = vector.load %arg8[%c0_21, %c0_22] : memref<8x1xf32, #tpu.memory_space<vmem>>, vector<8x1xf32>
        %cst_23 = arith.constant 0.001953125 : f32
        %31 = vector.broadcast %cst_23 : f32 to vector<8x1xf32>
        %32 = arith.mulf %30, %31 : vector<8x1xf32>
        %c0_24 = arith.constant 0 : index
        %c0_25 = arith.constant 0 : index
        %33 = vector.load %arg9[%c0_24, %c0_25] : memref<8x1xf32, #tpu.memory_space<vmem>>, vector<8x1xf32>
        %cst_26 = arith.constant 0.001953125 : f32
        %34 = vector.broadcast %cst_26 : f32 to vector<8x1xf32>
        %35 = arith.mulf %33, %34 : vector<8x1xf32>
        %36 = arith.mulf %32, %32 : vector<8x1xf32>
        %37 = arith.subf %35, %36 : vector<8x1xf32>
        %cst_27 = arith.constant 0.000000e+00 : f32
        %38 = vector.broadcast %cst_27 : f32 to vector<8x1xf32>
        %39 = arith.maximumf %37, %38 : vector<8x1xf32>
        %c0_28 = arith.constant 0 : index
        %c0_29 = arith.constant 0 : index
        %40 = vector.load %arg4[%c0_28, %c0_29] : memref<8x1xf32, #tpu.memory_space<vmem>>, vector<8x1xf32>
        %cst_30 = arith.constant 9.99999974E-6 : f32
        %41 = vector.broadcast %cst_30 : f32 to vector<8x1xf32>
        %42 = arith.addf %39, %41 : vector<8x1xf32>
        %43 = math.rsqrt %42 : vector<8x1xf32>
        %44 = arith.mulf %40, %43 : vector<8x1xf32>
        %c0_31 = arith.constant 0 : index
        %c0_32 = arith.constant 0 : index
        %45 = vector.load %arg10[%c0_31, %c0_32] : memref<8x1xf32, #tpu.memory_space<vmem>>, vector<8x1xf32>
        tpu.vector_store %arg10[%c0_31, %c0_32], %44 {strides = array<i32>} : memref<8x1xf32, #tpu.memory_space<vmem>>, vector<8x1xf32>,
        %c0_33 = arith.constant 0 : index
        %c0_34 = arith.constant 0 : index
        %46 = vector.load %arg5[%c0_33, %c0_34] : memref<8x1xf32, #tpu.memory_space<vmem>>, vector<8x1xf32>
        %47 = arith.mulf %32, %44 : vector<8x1xf32>
        %48 = arith.subf %46, %47 : vector<8x1xf32>
        %c0_35 = arith.constant 0 : index
        %c0_36 = arith.constant 0 : index
        %49 = vector.load %arg11[%c0_35, %c0_36] : memref<8x1xf32, #tpu.memory_space<vmem>>, vector<8x1xf32>
        tpu.vector_store %arg11[%c0_35, %c0_36], %48 {strides = array<i32>} : memref<8x1xf32, #tpu.memory_space<vmem>>, vector<8x1xf32>,
      } else {
      }
    } else {
    }
    %c1_i32 = arith.constant 1 : i32
    %3 = arith.cmpi eq, %arg0, %c1_i32 : i32
    %4 = arith.extui %3 : i1 to i32
    %c0_i32_1 = arith.constant 0 : i32
    %5 = arith.cmpi ne, %4, %c0_i32_1 : i32
    scf.if %5 {
      %6 = arith.index_cast %arg1 : i32 to index
      %c0 = arith.constant 0 : index
      %c0_2 = arith.constant 0 : index
      %7 = vector.load %arg7[%6, %c0, %c0_2] : memref<2x8x256xf32, #tpu.memory_space<vmem>>, vector<1x8x256xf32>
      %8 = vector.shape_cast %7 : vector<1x8x256xf32> to vector<8x256xf32>
      %c0_3 = arith.constant 0 : index
      %c0_4 = arith.constant 0 : index
      %9 = vector.load %arg10[%c0_3, %c0_4] : memref<8x1xf32, #tpu.memory_space<vmem>>, vector<8x1xf32>
      %10 = vector.broadcast %9 : vector<8x1xf32> to vector<8x256xf32>
      %11 = arith.mulf %8, %10 : vector<8x256xf32>
      %c0_5 = arith.constant 0 : index
      %c0_6 = arith.constant 0 : index
      %12 = vector.load %arg11[%c0_5, %c0_6] : memref<8x1xf32, #tpu.memory_space<vmem>>, vector<8x1xf32>
      %13 = vector.broadcast %12 : vector<8x1xf32> to vector<8x256xf32>
      %14 = arith.addf %11, %13 : vector<8x256xf32>
      %cst = arith.constant 5.000000e-01 : f32
      %15 = vector.broadcast %cst : f32 to vector<8x256xf32>
      %16 = arith.mulf %15, %14 : vector<8x256xf32>
      %cst_7 = arith.constant 0.707106769 : f32
      %17 = vector.broadcast %cst_7 : f32 to vector<8x256xf32>
      %18 = arith.mulf %14, %17 : vector<8x256xf32>
      %19 = math.erf %18 : vector<8x256xf32>
      %cst_8 = arith.constant 1.000000e+00 : f32
      %20 = vector.broadcast %cst_8 : f32 to vector<8x256xf32>
      %21 = arith.addf %20, %19 : vector<8x256xf32>
      %22 = arith.mulf %16, %21 : vector<8x256xf32>
      %c0_9 = arith.constant 0 : index
      %c0_10 = arith.constant 0 : index
      %c0_11 = arith.constant 0 : index
      %23 = vector.load %arg6[%c0_9, %c0_10, %c0_11] : memref<1x8x256xf32, #tpu.memory_space<vmem>>, vector<1x8x256xf32>
      %24 = vector.shape_cast %23 : vector<1x8x256xf32> to vector<8x256xf32>
      %25 = vector.shape_cast %22 : vector<8x256xf32> to vector<1x8x256xf32>
      tpu.vector_store %arg6[%c0_9, %c0_10, %c0_11], %25 {strides = array<i32>} : memref<1x8x256xf32, #tpu.memory_space<vmem>>, vector<1x8x256xf32>,
    } else {
    }
    return
  }
  func.func @transform_0(%arg0: i32, %arg1: i32) -> (i32, i32) {
    %c1_i32 = arith.constant 1 : i32
    %0 = arith.subi %c1_i32, %arg0 : i32
    %1 = arith.muli %arg1, %0 : i32
    %c0_i32 = arith.constant 0 : i32
    %c0_i32_0 = arith.constant 0 : i32
    return %c0_i32, %1 : i32, i32
  }
  func.func @transform_1(%arg0: i32, %arg1: i32) -> (i32, i32) {
    %c0_i32 = arith.constant 0 : i32
    %c0_i32_0 = arith.constant 0 : i32
    %c0_i32_1 = arith.constant 0 : i32
    return %c0_i32, %c0_i32_0 : i32, i32
  }
  func.func @transform_2(%arg0: i32, %arg1: i32) -> (i32, i32) {
    %c0_i32 = arith.constant 0 : i32
    %c0_i32_0 = arith.constant 0 : i32
    %c0_i32_1 = arith.constant 0 : i32
    return %c0_i32, %c0_i32_0 : i32, i32
  }
  func.func @transform_3(%arg0: i32, %arg1: i32) -> (i32, i32) {
    %c0_i32 = arith.constant 0 : i32
    %c0_i32_0 = arith.constant 0 : i32
    %c0_i32_1 = arith.constant 0 : i32
    return %c0_i32, %c0_i32_0 : i32, i32
  }
  func.func @transform_4(%arg0: i32, %arg1: i32) -> (i32, i32, i32) {
    %0 = arith.muli %arg1, %arg0 : i32
    %c0_i32 = arith.constant 0 : i32
    %c0_i32_0 = arith.constant 0 : i32
    %c0_i32_1 = arith.constant 0 : i32
    return %0, %c0_i32, %c0_i32_0 : i32, i32, i32
  }
}

</mosaic_0001>

<bundles_post_ra>
// kernel: tpu_custom_call.1
= control target key start
LH: loop header
LB: loop body
LE: loop exit
PB: predicated region body
PF: predicated region fallthrough
CT: control target
= control target key end

     0   :  { %9 = vsyncpa [#allocation8], 0  ;;  %s1107_s0 = inlined_call_operand.hbm [shape: bf16[36,512], index: 0, kind: input, shape index: {}]   ;;  %s1108_s1 = inlined_call_operand.vmem [shape: bf16[8,36], index: 1, kind: input, shape index: {}]   ;;  %s1109_s2 = inlined_call_operand.vmem [shape: f32[8,1], index: 2, kind: input, shape index: {}]   ;;  %s1110_s3 = inlined_call_operand.vmem [shape: f32[8,1], index: 3, kind: input, shape index: {}]   ;;  %s1111_s4 = inlined_call_operand.hbm [shape: f32[2,8,256], index: 4, kind: output, shape index: {}]  }
   0x1   :  { %11 = vsyncpa [#allocation8 + $0x1], 0 }
   0x2   :  { %12 = vsyncpa [#allocation9], 0 }
   0x3   :  { %14 = vsyncpa [#allocation9 + $0x1], 0  ;;  %s858_s15 = smov 0   ;;  %s860_s16 = smov 0  }
   0x4   :  { %s862_s17 = smov 0   ;;  %s864_s18 = smov 0  }
   0x5   :  { %s866_s19 = smov 0   ;;  %s868_s20 = smov 0  }
   0x6   :  { %s870_s21 = smov 0   ;;  %s872_s22 = smov 0  }
   0x7   :  { %s874_s23 = smov 0   ;;  %s876_s24 = smov 0  }
   0x8   :  { %s878_s25 = smov 0  }
   0x9 LB: > { %1116 = sst [smem:[#allocation13_spill]] %s819_s24  ;;  %s513_s26 = sadd.s32 4294967295, %s823_s25   ;;  %s823_s25 = sphi %s878_s25, %s20_s25   ;;  %s819_s24 = sphi %s876_s24, %s1139_s24   ;;  %s815_s23 = sphi %s874_s23, %s1138_s23   ;;  %s811_s22 = sphi %s872_s22, %s1128_s22   ;;  %s807_s21 = sphi %s870_s21, %s1137_s21   ;;  %s803_s20 = sphi %s868_s20, %s1136_s20   ;;  %s799_s19 = sphi %s866_s19, %s1135_s19   ;;  %s795_s18 = sphi %s864_s18, %s1134_s18   ;;  %s791_s17 = sphi %s862_s17, %s1133_s17   ;;  %s787_s16 = sphi %s860_s16, %s1132_s16   ;;  %s783_s15 = sphi %s858_s15, %s1131_s15  }
   0xa   : > { %s29_s28 = sadd.s32 1, %s815_s23  ;;  %s32_s29 = sadd.s32 1, %s819_s24 }
   0xb   : > { %p30_p0 = scmp.ge.s32.totalorder %s29_s28, 2  ;;  %s36_s30 = ssub.s32 1, %s819_s24 }
   0xc   : > { %s917_s5 = smul.u32 %s815_s23, %s36_s30  ;;  %s43_s6 = sadd.s32 1, %s803_s20 }
   0xd   : > { %s1141_s28 = smov (%p30_p0, %s29_s28), 0  ;;  %s1143_s29 = smov (!%p30_p0, %s32_s29), %s819_s24 }
   0xe   : > { %1117 = sst [smem:[#allocation14_spill]] %s1141_s28  ;;  %p50_p1 = scmp.ne.s32.totalorder %s803_s20, %s799_s19 }
   0xf   : > { %p51_p2 = scmp.eq.s32.totalorder %s823_s25, 0  ;;  %p34_p3 = scmp.ge.s32.totalorder %s1143_s29, 2 }
  0x10   : > { %p56_p4 = scmp.ne.s32.totalorder %s799_s19, %s795_s18  ;;  %p57_p6 = scmp.eq.s32.totalorder %s513_s26, 0 }
  0x11   : > { %p927_p5 = por %p51_p2, %p50_p1  ;;  %s1145_s29 = smov (%p34_p3, %s1143_s29), 0 }
  0x12   : > { %1119 = sst [smem:[#allocation15_spill]] %s1145_s29  ;;  %p933_p7 = por %p57_p6, %p56_p4 }
  0x13   : > { %s129_s9 = smul.u32 %s815_s23, %s819_s24  ;;  %s38_s10 = ssub.s32 1, %s1145_s29 }
  0x14   : > { %s130_s11 = smul.u32 %s1145_s29, %s1141_s28  ;;  %s134_s13 = sadd.s32 1, %s791_s17 }
  0x15   : > { %s39_s12 = smul.u32 %s38_s10, %s1141_s28  ;;  %p144_p8 = scmp.ne.s32.totalorder %s791_s17, %s787_s16 }
  0x16   : > { %s131_s14 = ssub.s32 %s129_s9, %s130_s11  ;;  %p145_p11 = scmp.eq.s32.totalorder %s513_s26, 3 }
  0x17   : > { %s40_s18 = ssub.s32 %s917_s5, %s39_s12  ;;  %p132_p9 = scmp.eq.s32.totalorder %s131_s14, 0 }
  0x18   : > { %p41_p10 = scmp.eq.s32.totalorder %s40_s18, 0  ;;  %p953_p12 = por %p145_p11, %p144_p8 }
  0x19   : > { %s948_s30 = scalar_select %p132_p9, %s791_s17, %s134_s13  }
  0x1a   : > { %s951_s27 = scalar_select %p41_p10, %s803_s20, %s43_s6  }
  0x1b   : > { %s1121_s24 = scalar_select %p953_p12, 1, 0 }
  0x1c   : > { %p150_p13 = scmp.ne.s32.totalorder %s787_s16, %s783_s15  ;;  %s1122_s10 = sadd.s32 4294967294, %s823_s25  }
  0x1d   : > { %p151_p0 = scmp.eq.s32.totalorder %s1122_s10, 3  ;;  %p560_p1 = scmp.lt.s32.totalorder %s823_s25, 4 }
  0x1e   : > { %s180_s9 = sand.u32 1, %s803_s20   ;;  %s542_s26 = sshll.u32 %s917_s5, 7 }
  0x1f   : > { %p963_p2 = por %p151_p0, %p150_p13  ;;  %s546_s12 = smul.u32 40, %s180_s9 }
  0x20   : > { %s971_s6 = scalar_lea.hbm %s1107_s0, %s542_s26  ;;  %p975_p3 = pnand %p560_p1, %p927_p5 }
  0x21   : > { %s1123_s11 = scalar_select %p963_p2, 1, 0 }
  0x22   : > { %s184_s10 = scalar_lea.vmem [#allocation7], %s546_s12  ;;  %s982_s5 = scalar_lea.sflag [#allocation8], %s180_s9 }
  0x23   : > { %s193_s29 = sshll.u32 %s184_s10, 4  ;;  %s671_s26 = scalar_lea.hbm %s971_s6, 640  ;;  %s979_s29 = int_to_ptr.vmem [resolvable:$true] %s193_s29 }
  0x24   : > { %p672_p6 = scmp.ne.s32.totalorder %s971_s6, %s671_s26  ;;  %p673_p8 = pneg %p975_p3 }
  0x25   : > { %s676_s13 = scalar_lea.hbm %s1107_s0, 1280  ;;  %p677_p10 = scmp.lt.u32.totalorder %s971_s6, %s1107_s0 }
  0x26   : > { %p674_p9 = pnand %p673_p8, %p672_p6  ;;  %p678_p11 = scmp.lt.u32.totalorder %s676_s13, %s671_s26 }
  0x27   : > { %p680_p0 = scmp.lt.u32.totalorder %s671_s26, %s971_s6 }
  0x28   : > { %p675_p5 = pneg %p674_p9  ;;  %p679_p13 = por %p678_p11, %p677_p10 }
  0x2a   : > { %p681_p1 = por %p680_p0, %p679_p13 }
  0x2c   : > { %p682_p4 = pnand %p681_p1, %p675_p5 }
  0x2e   : > { %685 = shalt.err (!%p682_p4)
}
  0x2f   : > { %s686_s9 = scalar_lea.vmem %s979_s29, 640  ;;  %s825_s10 = smov [#allocation7]  }
  0x30   : > { %p687_p6 = scmp.ne.s32.totalorder %s979_s29, %s686_s9  ;;  %s691_s7 = sshll.u32 %s825_s10, 4  ;;  %s692_s7 = int_to_ptr.vmem [resolvable:$false] %s691_s7 }
  0x31   : > { %s693_s28 = scalar_lea.vmem %s692_s7, 1280  ;;  %p694_p12 = scmp.lt.s32.totalorder %s979_s29, %s692_s7 }
  0x32   : > { %p689_p9 = pnand %p687_p6, %p673_p8  ;;  %p695_p10 = scmp.lt.s32.totalorder %s693_s28, %s686_s9 }
  0x34   : > { %p690_p2 = pneg %p689_p9  ;;  %p696_p11 = por %p695_p10, %p694_p12 }
  0x36   : > { %p697_p13 = pnand %p696_p11, %p690_p2 }
  0x38   : > { %700 = shalt.err (!%p697_p13)
}
  0x39   : > { %s826_s26 = smov 256   ;;  %s827_s14 = smov 128  }
  0x3a   : > { %s828_s13 = smov 8   ;;  %p201_p4 = scmp.lt.s32.totalorder %s823_s25, 5 }
  0x3b   : > { %555 = dma.hbm_to_vmem [thread:$0]  (!%p975_p3), %s971_s6, 640, %s979_s29, %s982_s5, %s826_s26, %s827_s14, %s828_s13  }
  0x3c   : > { %p1125_p8 = scmp.ge.s32.totalorder %s823_s25, 1 }
  0x3e   : > { %p202_p5 = pnand %p1125_p8, %p201_p4 }
  0x3f   : > { %s207_s12 = sand.u32 (!%p202_p5), 1, %s799_s19  }
  0x40   : > { %205 = sbr.rel (%p202_p5) target bundleno = 680 (0x2a8), region = 36  ;;  %s208_s10 = scalar_lea.sflag (!%p202_p5), [#allocation8], %s207_s12 }
  0x41   : > { %s547_s9 = smul.u32 (!%p202_p5), 40, %s207_s12 }
  0x43   : > { %s211_s7 = scalar_lea.vmem (!%p202_p5), [#allocation7], %s547_s9 }
  0x47   : > { %774 = dma.done.wait (%p933_p7), %s208_s10, 640  }
  0x48   : > { %776 = vsyncadd (%p933_p7), %s208_s10, 4294966656  ;;  %s233_s28 = sand.u32 1, %s787_s16   ;;  %p521_p12 = scmp.ne.s32.totalorder %s811_s22, 0 }
  0x49   : > { %s520_s29 = sshll.u32 %s233_s28, 4  ;;  %p522_p2 = scmp.ne.s32.totalorder (!%p521_p12), %s807_s21, 0 }
  0x4a   : > { %s1021_s6 = scalar_lea.vmem [#allocation10], %s520_s29  ;;  %244 = sbr.rel (%p521_p12) target bundleno = 498 (0x1f2), region = 44 }
  0x51   : > { %248 = sbr.rel (%p522_p2) target bundleno = 88 (0x58), region = 48  ;;  %vm249_vm0 = vcmask (!%p522_p2), 7168   ;;  %v829_v0 = vmov (!%p522_p2), 0.0  }
  0x52   : > { %250 = vst.msk [vmem:[#allocation3] sm:$0xff] (!%p522_p2), %vm249_vm0, %v829_v0  ;;  %251 = vst.msk [vmem:[#allocation4] sm:$0xff] (!%p522_p2), %vm249_vm0, %v829_v0 }
  0x58 PF: > { %v656_v1 = vld [vmem:[%s211_s7 + $0x4] ss:$8 sps:$4 sm:$0xff]   ;;  %v658_v2 = vld [vmem:[%s211_s7] ss:$8 sps:$4 sm:$0xff]   ;;  %v830_v3 = vmov 0   ;;  %vm287_vm1 = vcmask 1041408  }
  0x59   : > { %326 = vmatprep.mubr.bf16.mxu0 %v830_v3  ;;  %294 = vmatprep.subr.bf16.mxu0 %v656_v1  ;;  %v659_v4 = vld [vmem:[%s211_s7 + $0x14] ss:$8 sps:$4 sm:$0xff]   ;;  %v257_v5 = vld [vmem:[%s211_s7 + $0x20] sm:$0x33]  ;;  %v661_v6 = vld [vmem:[%s211_s7 + $0x10] ss:$8 sps:$4 sm:$0xff]  }
  0x5a   : > { %295 = vmatpush1.bf16.msra.mxu0 %v658_v2  ;;  %v528_v7 = vcombine.high %v257_v5, %v257_v5  ;;  %v527_v8 = vcombine.low %v257_v5, %v257_v5  ;;  %v252_v10 = vld [vmem:[%s1108_s1] sm:$0xf]  ;;  %vm283_vm2 = vcmask 293888   ;;  %s543_s5 = sshll.u32 %s807_s21, 4  ;;  %vm345_vm3 = vcmask 7168   ;;  %v347_v22 = vld [vmem:[#allocation4] sm:$0xff] }
  0x5b   : > { %296 = vmatprep.subr.bf16.mxu0 %v659_v4  ;;  %s337_s26 = scalar_lea.vmem [#allocation2], %s543_s5  ;;  %v340_v19 = vld [vmem:[#allocation3] sm:$0xff]  ;;  %p533_p7 = scmp.ne.s32.totalorder %s807_s21, 1 }
  0x5c   : > { %v289_v9 = vsel %vm287_vm1, %v527_v8, 0  ;;  %v366_v33 = vld [vmem:[%s1109_s2] sm:$0xff] (!%p533_p7) }
  0x5d   : > { %v371_v36 = vld [vmem:[%s1110_s3] sm:$0xff] (!%p533_p7) }
  0x5e   : > { %297 = vmatpush1.bf16.msra.mxu0 %v661_v6 }
  0x5f   : > { %529 = vmatprep.subr.msk.bf16.mxu0 %vm287_vm1, %v528_v7 }
  0x62   : > { %299 = vmatpush1.bf16.msra.mxu0 %v289_v9 }
  0x65   : > { %530 = vmatmul.mubr.msk.bf16.vlgmr.msra.gmra.mrb[0].mxu0 %vm283_vm2, %v252_v10 }
 0x138   : > { %v328_v11 = vpop.f32.mrb[0].mxu0 }
 0x139   : > { %338 = vst [vmem:[%s337_s26] sm:$0xff] %v328_v11  ;;  %v330_v12 = vpop.f32.mrb[1].mxu0  ;;  %v348_v13 = vmul.f32 %v328_v11, %v328_v11 }
 0x13a   : > { %339 = vst [vmem:[%s337_s26 + $0x8] sm:$0xff] %v330_v12  ;;  %v332_v14 = vpop.f32.mrb[2].mxu0  ;;  %v341_v15 = vadd.f32 %v330_v12, %v328_v11  ;;  %v349_v16 = vmul.f32 %v330_v12, %v330_v12 }
 0x13b   : > { %v333_v17 = vpop.f32.mrb[3].mxu0 }
 0x13c   : > { %342 = vadd.xlane.f32.xlu0 %v341_v15  ;;  %v350_v18 = vadd.f32 %v349_v16, %v348_v13 }
 0x140   : > { %351 = vadd.xlane.f32.xlu0 %v350_v18 }
 0x1c9   : > { %v343_v20 = vpop.xlane.xlu0 %342 }
 0x1ca   : > { %v344_v21 = vadd.f32 %v343_v20, %v340_v19  ;;  %358 = sbr.rel (%p533_p7) target bundleno = 498 (0x1f2), region = 52 }
 0x1cc   : > { %346 = vst.msk [vmem:[#allocation3] sm:$0xff] %vm345_vm3, %v344_v21 }
 0x1cd   : > { %v352_v23 = vpop.xlane.xlu0 %351 }
 0x1ce   : > { %v353_v24 = vadd.f32 %v352_v23, %v347_v22 }
 0x1d0   : > { %354 = vst.msk [vmem:[#allocation4] sm:$0xff] %vm345_vm3, %v353_v24 }
 0x1d3   : > { %v359_v25 = vld [vmem:[#allocation3] sm:$0xff] }
 0x1d4   : > { %v360_v27 = vmul.f32 0.001953125, %v359_v25 }
 0x1d6   : > { %v363_v29 = vmul.f32 %v360_v27, %v360_v27 }
 0x1d7   : > { %v361_v26 = vld [vmem:[#allocation4] sm:$0xff] }
 0x1d8   : > { %v362_v28 = vmul.f32 0.001953125, %v361_v26 }
 0x1da   : > { %v364_v30 = vsub.f32 %v362_v28, %v363_v29 }
 0x1dc   : > { %v365_v31 = vmax.f32 %v364_v30, 0.0 }
 0x1de   : > { %v367_v32 = vadd.f32 1e-05, %v365_v31 }
 0x1e0   : > { %664 = vrsqrt.f32 %v367_v32 }
 0x1ea   : > { %v665_v34 = vpop.eup %664 }
 0x1eb   : > { %v369_v35 = vmul.f32 %v665_v34, %v366_v33 }
 0x1ed   : > { %370 = vst.msk [vmem:[#allocation5] sm:$0xff] %vm345_vm3, %v369_v35  ;;  %v372_v37 = vmul.f32 %v369_v35, %v360_v27 }
 0x1ef   : > { %v373_v38 = vsub.f32 %v371_v36, %v372_v37 }
 0x1f1   : > { %374 = vst.msk [vmem:[#allocation6] sm:$0xff] %vm345_vm3, %v373_v38 }
 0x1f2 PF: > { %p534_p3 = scmp.ne.s32.totalorder %s811_s22, 1 }
 0x1f3   : > { %v831_v40 = vmov (!%p534_p3), 0   ;;  %s544_s10 = sshll.u32 (!%p534_p3), %s807_s21, 4 }
 0x1f4   : > { %378 = sbr.rel (%p534_p3) target bundleno = 654 (0x28e), region = 56  ;;  %v384_v39 = vld [vmem:[#allocation5] sm:$0xff] (!%p534_p3)  ;;  %666 = vset.pattern.permute.xlu0 (!%p534_p3), %v831_v40  ;;  %s381_s7 = scalar_lea.vmem (!%p534_p3), [#allocation2], %s544_s10 }
 0x1f5   : > { %387 = vperm.xlu0 (!%p534_p3), %666, %v384_v39   ;;  %v382_v43 = vld [vmem:[%s381_s7] sm:$0xff] (!%p534_p3)  ;;  %v383_v44 = vld [vmem:[%s381_s7 + $0x8] sm:$0xff] (!%p534_p3) }
 0x1f8   : > { %v392_v41 = vld [vmem:[#allocation6] sm:$0xff] (!%p534_p3) }
 0x1f9   : > { %395 = vperm.xlu0 (!%p534_p3), %666, %v392_v41  }
 0x274   : > { %v388_v42 = vpop.permute.xlu0 %387 }
 0x275   : > { %v390_v45 = vmul.f32 %v388_v42, %v382_v43  ;;  %v391_v46 = vmul.f32 %v388_v42, %v383_v44 }
 0x278   : > { %v396_v47 = vpop.permute.xlu0 %395 }
 0x279   : > { %v398_v48 = vadd.f32 %v396_v47, %v390_v45  ;;  %v399_v49 = vadd.f32 %v396_v47, %v391_v46 }
 0x27b   : > { %v402_v50 = vmul.f32 0.70710677, %v398_v48  ;;  %v403_v51 = vmul.f32 0.70710677, %v399_v49  ;;  %v400_v54 = vmul.f32 0.5, %v398_v48  ;;  %v401_v56 = vmul.f32 0.5, %v399_v49 }
 0x27d   : > { %667 = verf.f32 %v402_v50 }
 0x27e   : > { %669 = verf.f32 %v403_v51 }
 0x287   : > { %v668_v52 = vpop.eup %667 }
 0x288   : > { %v670_v53 = vpop.eup %669  ;;  %v406_v55 = vadd.f32 1.0, %v668_v52 }
 0x289   : > { %v407_v57 = vadd.f32 1.0, %v670_v53 }
 0x28a   : > { %v408_v58 = vmul.f32 %v406_v55, %v400_v54 }
 0x28b   : > { %v409_v59 = vmul.f32 %v407_v57, %v401_v56 }
 0x28c   : > { %410 = vst [vmem:[%s1021_s6] sm:$0xff] %v408_v58 }
 0x28d   : > { %411 = vst [vmem:[%s1021_s6 + $0x8] sm:$0xff] %v409_v59 }
 0x28e PF: > { %s420_s29 = smul.u32 %s807_s21, %s811_s22  ;;  %s428_s8 = sshll.u32 %s1021_s6, 4  ;;  %s1047_s8 = int_to_ptr.vmem [resolvable:$true] %s428_s8 }
 0x28f   : > { %s413_s13 = scalar_lea.sflag [#allocation9], %s233_s28  ;;  %s701_s12 = scalar_lea.vmem %s1047_s8, 256 }
 0x290   : > { %s545_s18 = sshll.u32 %s420_s29, 8  ;;  %p702_p0 = scmp.ne.s32.totalorder %s1047_s8, %s701_s12 }
 0x291   : > { %s426_s14 = scalar_lea.hbm %s1111_s4, %s545_s18  ;;  %p1126_p1 = scmp.ne.s32.totalorder %s1121_s24, 0 }
 0x292   : > { %s832_s9 = smov [#allocation10]  }
 0x293   : > { %p703_p6 = pnand %p702_p0, %p1126_p1  ;;  %s705_s21 = sshll.u32 %s832_s9, 4  ;;  %s706_s21 = int_to_ptr.vmem [resolvable:$false] %s705_s21 }
 0x294   : > { %s707_s22 = scalar_lea.vmem %s706_s21, 512  ;;  %p708_p10 = scmp.lt.s32.totalorder %s1047_s8, %s706_s21 }
 0x295   : > { %p704_p9 = pneg %p703_p6  ;;  %p709_p11 = scmp.lt.s32.totalorder %s707_s22, %s701_s12 }
 0x297   : > { %p710_p13 = por %p709_p11, %p708_p10 }
 0x299   : > { %p711_p4 = pnand %p710_p13, %p704_p9 }
 0x29b   : > { %714 = shalt.err (!%p711_p4)
}
 0x29c   : > { %s715_s6 = scalar_lea.hbm %s426_s14, 256  ;;  %s719_s7 = scalar_lea.hbm %s1111_s4, 512 }
 0x29d   : > { %p716_p8 = scmp.ne.s32.totalorder %s426_s14, %s715_s6  ;;  %p720_p2 = scmp.lt.u32.totalorder %s426_s14, %s1111_s4 }
 0x29e   : > { %p721_p7 = scmp.lt.u32.totalorder %s719_s7, %s715_s6  ;;  %p723_p0 = scmp.lt.u32.totalorder %s715_s6, %s426_s14 }
 0x29f   : > { %p717_p5 = pnand %p716_p8, %p1126_p1 }
 0x2a0   : > { %p722_p3 = por %p721_p7, %p720_p2 }
 0x2a1   : > { %p718_p12 = pneg %p717_p5 }
 0x2a2   : > { %p724_p6 = por %p723_p0, %p722_p3 }
 0x2a4   : > { %p725_p9 = pnand %p724_p6, %p718_p12 }
 0x2a6   : > { %728 = shalt.err (!%p725_p9)
}
 0x2a7   : > { %550 = dma.vmem_to_hbm [thread:$0]  (%p1126_p1), %s1047_s8, 256, %s426_s14, %s413_s13  }
 0x2a8 PF: > { %p561_p10 = scmp.ge.s32.totalorder %s823_s25, 2  ;;  %s440_s5 = sand.u32 1, %s783_s15  }
 0x2a9   : > { %p1127_p11 = scmp.ne.s32.totalorder %s1123_s11, 0  ;;  %s441_s26 = scalar_lea.sflag [#allocation9], %s440_s5 }
 0x2ab   : > { %p557_p13 = pnand %p561_p10, %p1127_p11 }
 0x2ad   : > { %778 = dma.done.wait (!%p557_p13), %s441_s26, 256  }
 0x2ae   : > { %780 = vsyncadd (!%p557_p13), %s441_s26, 4294967040  ;;  %s20_s25 = sadd.s32 1, %s823_s25   ;;  %s1128_s22 = sld [smem:[#allocation13_spill]] }
 0x2af   : > { %p17_p4 = scmp.ge.s32.totalorder %s20_s25, 6   ;;  %s1129_s24 = sld [smem:[#allocation14_spill]] }
 0x2b0   : > { %s1130_s8 = sld [smem:[#allocation15_spill]]  ;;  %s1131_s15 = smov %s787_s16 }
 0x2b1   : > { %s1132_s16 = smov %s791_s17  ;;  %s1133_s17 = smov %s948_s30 }
 0x2b2   : > { %s1134_s18 = smov %s799_s19  ;;  %s1135_s19 = smov %s803_s20 }
 0x2b3   : > { %s1136_s20 = smov %s951_s27  ;;  %s1137_s21 = smov %s815_s23 }
 0x2b4   :  { %19 = sbr.rel (!%p17_p4) target bundleno = 9 (0x9), region = 99 }
 0x2b5   : > { %s1138_s23 = smov %s1129_s24 }
 0x2b6   : > { %s1139_s24 = smov %s1130_s8 }
 0x2bb   :  { %446 = vsyncpa [#allocation8], 1 }
 0x2bc   :  { %448 = vsyncpa [#allocation8 + $0x1], 1 }
 0x2bd   :  { %449 = vsyncpa [#allocation9], 1 }
 0x2be   :  { %451 = vsyncpa [#allocation9 + $0x1], 1 }

</bundles_post_ra>
